<compile_context>
chip_gen: v7x
topology: tpu7x:2x2x1
jax: 0.10.0
libtpu: 0.0.40
codegen_flags: <defaults>
</compile_context>

<pallas_src>
import functools

import jax
import jax.numpy as jnp
from jax.experimental import pallas as pl
from jax.experimental.pallas import tpu as pltpu

LANE = 128
SUB = 8


def _round_up(x, m):
    return (x + m - 1) // m * m


def _vmem_capacity_bytes():
    """Physical VMEM per TensorCore for the current generation (fallback: v7x's 64 MiB)."""
    try:
        info = pltpu.get_tpu_info()
        cap = getattr(info, "vmem_capacity_bytes", None)
        if cap:
            return int(cap)
    except Exception:
        pass
    return 64 * 1024 * 1024


def _unit_kernel(x_ref, w_ref, b_ref, o_ref, *, d_in):
    """LayerNorm (affine pre-folded into W/b) -> Linear (bf16 MXU, f32 acc) -> exact GELU."""
    x = x_ref[...].astype(jnp.float32)
    d_in_pad = x.shape[-1]

    # ---- LayerNorm statistics over the valid d_in features (eps = 1e-5, nn.LayerNorm default).
    # Padded lanes of x are zero, so the plain sum equals the sum over valid lanes.
    inv_n = jnp.float32(1.0 / d_in)
    mean = jnp.sum(x, axis=-1, keepdims=True) * inv_n
    centered = x - mean
    if d_in != d_in_pad:
        # Keep padded lanes at exactly 0 so they don't contribute to the variance
        # (and so the bf16 matmul's padded K rows stay inert).
        lane = jax.lax.broadcasted_iota(jnp.int32, (1, d_in_pad), 1)
        centered = jnp.where(lane < d_in, centered, 0.0)
    var = jnp.sum(centered * centered, axis=-1, keepdims=True) * inv_n
    xn = centered * jax.lax.rsqrt(var + 1e-5)

    # ---- Linear on the MXU: bf16 operands, f32 accumulation.  gamma/beta already folded in.
    y = jnp.dot(xn.astype(jnp.bfloat16), w_ref[...], preferred_element_type=jnp.float32)
    y = y + b_ref[...]

    # ---- GELU (exact, erf-based — nn.GELU default).
    y = 0.5 * y * (1.0 + jax.lax.erf(y * 0.7071067811865476))

    # ---- Dropout: eval mode => identity.
    o_ref[...] = y.astype(o_ref.dtype)


def prepare_unit_params(gamma, beta, w, b):
    """One-time weight prep: fold LN affine into the Linear, pad to lane multiples, W -> bf16.

    w is stored [in_features, out_features] (transposed vs. torch's fc.weight).
    Returns (w_padded_bf16 [din_p, dout_p], b_padded_f32 [1, dout_p]).
    """
    d_in, d_out = w.shape
    din_p = _round_up(d_in, LANE)
    dout_p = _round_up(d_out, LANE)

    gamma32 = gamma.astype(jnp.float32)
    beta32 = beta.astype(jnp.float32)
    w32 = w.astype(jnp.float32)
    b32 = b.astype(jnp.float32)

    w_fold = gamma32[:, None] * w32            # LN scale folded into weights
    b_fold = beta32 @ w32 + b32                # LN shift folded into bias

    w_pad = jnp.zeros((din_p, dout_p), jnp.bfloat16).at[:d_in, :d_out].set(
        w_fold.astype(jnp.bfloat16))
    b_pad = jnp.zeros((1, dout_p), jnp.float32).at[0, :d_out].set(b_fold)
    return w_pad, b_pad


def unit_forward(x, w_pad, b_pad, d_out, *, block_b=512):
    """x: [B, Din]; w_pad/b_pad: outputs of prepare_unit_params; d_out: true out_features."""
    B, d_in = x.shape
    din_p, dout_p = w_pad.shape

    budget = max(int(0.8 * _vmem_capacity_bytes()), 16 * 1024 * 1024)

    # ---- N (Dout) tiling: keep W to at most ~1/3 of the VMEM budget. -------------------
    w_full_bytes = din_p * dout_p * 2  # bf16
    if w_full_bytes <= budget // 3:
        tn = dout_p
        w_bufs = 1                      # constant block index -> single-buffer
    else:
        tn = max(LANE, ((budget // 3) // (4 * din_p)) // LANE * LANE)  # 2 bufs * 2B * din_p * tn
        tn = min(tn, dout_p)
        w_bufs = 2
    grid_n = pl.cdiv(dout_p, tn)
    dout_pp = grid_n * tn

    # ---- Batch tiling: size tb against the remaining VMEM budget (incl. f32 temps). ----
    w_resident = w_bufs * (din_p * tn * 2 + tn * 4)          # W + bias
    per_row = din_p * 18 + tn * 20                           # x(2 bufs) + LN temps + out(2 bufs) + y/GELU temps
    avail = max(budget - w_resident, per_row * SUB)
    tb = max(SUB, min(block_b, (avail // per_row) // SUB * SUB))

    b_aligned = _round_up(B, SUB)
    tb = min(tb, b_aligned)
    # Prefer >= 2 batch tiles when the batch allows it (lets v7x shard across both TCs).
    if b_aligned > SUB and b_aligned <= 2 * tb:
        tb = max(SUB, min(tb, _round_up((b_aligned + 1) // 2, SUB)))
    b_p = _round_up(B, tb)
    grid_b = b_p // tb

    # ---- Avoid per-call padding copies when already aligned. ----------------------------
    if (d_in != din_p) or (b_p != B):
        x_in = jnp.zeros((b_p, din_p), x.dtype).at[:B, :d_in].set(x)
    else:
        x_in = x
    if dout_pp != dout_p:
        w_in = jnp.zeros((din_p, dout_pp), w_pad.dtype).at[:, :dout_p].set(w_pad)
        b_in = jnp.zeros((1, dout_pp), b_pad.dtype).at[:, :dout_p].set(b_pad)
    else:
        w_in, b_in = w_pad, b_pad

    # ---- VMEM limit: actual tiles + resident params + f32 intermediates + headroom. -----
    tiles_bytes = 2 * tb * din_p * 4 + 2 * tb * tn * 4
    temps_bytes = tb * (din_p * 10 + tn * 12)
    vmem_limit = int(min(budget, max(16 * 1024 * 1024,
                                     tiles_bytes + temps_bytes + w_resident + (2 << 20))))

    param_mode = {"pipeline_mode": pl.Buffered(1)} if grid_n == 1 else {}

    kernel = functools.partial(_unit_kernel, d_in=d_in)

    out_p = pl.pallas_call(
        kernel,
        out_shape=jax.ShapeDtypeStruct((b_p, dout_pp), x.dtype),
        grid_spec=pl.GridSpec(
            # N outer, batch inner: a W tile stays VMEM-resident while batch tiles stream.
            grid=(grid_n, grid_b),
            in_specs=[
                pl.BlockSpec((tb, din_p), lambda j, i: (i, 0)),              # x
                pl.BlockSpec((din_p, tn), lambda j, i: (0, j), **param_mode),  # W (bf16)
                pl.BlockSpec((1, tn), lambda j, i: (0, j), **param_mode),      # bias
            ],
            out_specs=pl.BlockSpec((tb, tn), lambda j, i: (i, j)),
        ),
        compiler_params=pltpu.CompilerParams(
            dimension_semantics=("parallel", "parallel"),
            vmem_limit_bytes=vmem_limit,
        ),
    )(x_in, w_in, b_in)

    if b_p == B and dout_pp == d_out:
        return out_p
    return out_p[:B, :d_out]


if __name__ == "__main__":
    B, Din, Dout = 8, 32, 64

    key = jax.random.PRNGKey(0)
    kx, kw, kb, kg, kbe = jax.random.split(key, 5)

    x = jax.random.normal(kx, (B, Din), dtype=jnp.float32)

    # Deterministic parameters (non-trivial gamma/beta to exercise the affine folding).
    gamma = 1.0 + 0.1 * jax.random.normal(kg, (Din,), dtype=jnp.float32)
    beta = 0.1 * jax.random.normal(kbe, (Din,), dtype=jnp.float32)
    bound = 1.0 / (Din ** 0.5)
    w = jax.random.uniform(kw, (Din, Dout), minval=-bound, maxval=bound,
                           dtype=jnp.float32)  # stored [in, out] (W.T vs PyTorch fc.weight)
    b = jax.random.uniform(kb, (Dout,), minval=-bound, maxval=bound, dtype=jnp.float32)

    # One-time weight prep (fold + pad + bf16), then the fused kernel.
    w_pad, b_pad = prepare_unit_params(gamma, beta, w, b)
    out = unit_forward(x, w_pad, b_pad, d_out=Dout)
    jax.block_until_ready(out)

    # Pure-JAX reference (same math: LayerNorm -> Linear -> exact GELU -> eval dropout).
    xn = (x - x.mean(-1, keepdims=True)) * jax.lax.rsqrt(x.var(-1, keepdims=True) + 1e-5)
    xn = xn * gamma + beta
    y = xn @ w + b
    ref = 0.5 * y * (1.0 + jax.lax.erf(y * 0.7071067811865476))

    assert out.shape == ref.shape
    # bf16 MXU operands (f32 accumulation) -> loosened tolerance vs. the pure-f32 reference.
    assert jnp.allclose(out, ref, atol=3e-2, rtol=3e-2), float(jnp.max(jnp.abs(out - ref)))

    print("KERNEL_OK")
</pallas_src>

<mosaic_0001>
module attributes {stable_mosaic.version = 11 : i64} {
  func.func @_unit_kernel(%arg0: i32, %arg1: i32, %arg2: memref<8x128xf32, #tpu.memory_space<vmem>>, %arg3: memref<128x128xbf16, #tpu.memory_space<vmem>>, %arg4: memref<1x128xf32, #tpu.memory_space<vmem>>, %arg5: memref<8x128xf32, #tpu.memory_space<vmem>>) attributes {dimension_semantics = [#tpu.dimension_semantics<parallel>, #tpu.dimension_semantics<parallel>], iteration_bounds = array<i64: 1, 1>, scalar_prefetch = 0 : i64, scratch_operands = 0 : i64, tpu.core_type = #tpu.core_type<tc>, window_params = [{transform_indices = @transform_0, window_bounds = array<i64: 8, 128>}, {pipeline_mode = #tpu.pipeline_mode<synchronous>, transform_indices = @transform_1, window_bounds = array<i64: 128, 128>}, {pipeline_mode = #tpu.pipeline_mode<synchronous>, transform_indices = @transform_2, window_bounds = array<i64: 1, 128>}, {transform_indices = @transform_3, window_bounds = array<i64: 8, 128>}]} {
    %c0 = arith.constant 0 : index
    %c0_0 = arith.constant 0 : index
    %0 = vector.load %arg2[%c0, %c0_0] : memref<8x128xf32, #tpu.memory_space<vmem>>, vector<8x128xf32>
    %cst = arith.constant dense<0.000000e+00> : vector<8xf32>
    %1 = vector.multi_reduction <add>, %0, %cst [1] : vector<8x128xf32> to vector<8xf32>
    %2 = vector.shape_cast %1 : vector<8xf32> to vector<8x1xf32>
    %cst_1 = arith.constant 3.125000e-02 : f32
    %3 = vector.broadcast %cst_1 : f32 to vector<8x1xf32>
    %4 = arith.mulf %2, %3 : vector<8x1xf32>
    %5 = vector.broadcast %4 : vector<8x1xf32> to vector<8x128xf32>
    %6 = arith.subf %0, %5 : vector<8x128xf32>
    %7 = tpu.iota {dimensions = array<i32: 1>} : vector<1x128xi32>
    %c32_i32 = arith.constant 32 : i32
    %8 = vector.broadcast %c32_i32 : i32 to vector<1x128xi32>
    %9 = arith.cmpi slt, %7, %8 : vector<1x128xi32>
    %cst_2 = arith.constant 0.000000e+00 : f32
    %10 = vector.shape_cast %9 : vector<1x128xi1> to vector<1x128xi1>
    %11 = vector.broadcast %10 : vector<1x128xi1> to vector<8x128xi1>
    %12 = vector.broadcast %cst_2 : f32 to vector<8x128xf32>
    %13 = arith.select %11, %6, %12 : vector<8x128xi1>, vector<8x128xf32>
    %14 = arith.mulf %13, %13 : vector<8x128xf32>
    %cst_3 = arith.constant dense<0.000000e+00> : vector<8xf32>
    %15 = vector.multi_reduction <add>, %14, %cst_3 [1] : vector<8x128xf32> to vector<8xf32>
    %16 = vector.shape_cast %15 : vector<8xf32> to vector<8x1xf32>
    %cst_4 = arith.constant 3.125000e-02 : f32
    %17 = vector.broadcast %cst_4 : f32 to vector<8x1xf32>
    %18 = arith.mulf %16, %17 : vector<8x1xf32>
    %cst_5 = arith.constant 9.99999974E-6 : f32
    %19 = vector.broadcast %cst_5 : f32 to vector<8x1xf32>
    %20 = arith.addf %18, %19 : vector<8x1xf32>
    %21 = math.rsqrt %20 : vector<8x1xf32>
    %22 = vector.broadcast %21 : vector<8x1xf32> to vector<8x128xf32>
    %23 = arith.mulf %13, %22 : vector<8x128xf32>
    %24 = arith.truncf %23 : vector<8x128xf32> to vector<8x128xbf16>
    %c0_6 = arith.constant 0 : index
    %c0_7 = arith.constant 0 : index
    %25 = vector.load %arg3[%c0_6, %c0_7] : memref<128x128xbf16, #tpu.memory_space<vmem>>, vector<128x128xbf16>
    %cst_8 = arith.constant dense<0.000000e+00> : vector<8x128xf32>
    %26 = tpu.matmul %24, %25, %cst_8 {dimension_numbers = #tpu.dot_dimension_numbers<[1], [0], [0], [1], [0, 0, 1, 1], [], []>} : vector<8x128xbf16>, vector<128x128xbf16>, vector<8x128xf32> -> vector<8x128xf32>
    %c0_9 = arith.constant 0 : index
    %c0_10 = arith.constant 0 : index
    %27 = vector.load %arg4[%c0_9, %c0_10] : memref<1x128xf32, #tpu.memory_space<vmem>>, vector<1x128xf32>
    %28 = vector.broadcast %27 : vector<1x128xf32> to vector<8x128xf32>
    %29 = arith.addf %26, %28 : vector<8x128xf32>
    %cst_11 = arith.constant 5.000000e-01 : f32
    %30 = vector.broadcast %cst_11 : f32 to vector<8x128xf32>
    %31 = arith.mulf %30, %29 : vector<8x128xf32>
    %cst_12 = arith.constant 0.707106769 : f32
    %32 = vector.broadcast %cst_12 : f32 to vector<8x128xf32>
    %33 = arith.mulf %29, %32 : vector<8x128xf32>
    %34 = math.erf %33 : vector<8x128xf32>
    %cst_13 = arith.constant 1.000000e+00 : f32
    %35 = vector.broadcast %cst_13 : f32 to vector<8x128xf32>
    %36 = arith.addf %35, %34 : vector<8x128xf32>
    %37 = arith.mulf %31, %36 : vector<8x128xf32>
    %c0_14 = arith.constant 0 : index
    %c0_15 = arith.constant 0 : index
    %38 = vector.load %arg5[%c0_14, %c0_15] : memref<8x128xf32, #tpu.memory_space<vmem>>, vector<8x128xf32>
    tpu.vector_store %arg5[%c0_14, %c0_15], %37 {strides = array<i32>} : memref<8x128xf32, #tpu.memory_space<vmem>>, vector<8x128xf32>,
    return
  }
  func.func @transform_0(%arg0: i32, %arg1: i32) -> (i32, i32) {
    %c0_i32 = arith.constant 0 : i32
    %c0_i32_0 = arith.constant 0 : i32
    return %arg1, %c0_i32 : i32, i32
  }
  func.func @transform_1(%arg0: i32, %arg1: i32) -> (i32, i32) {
    %c0_i32 = arith.constant 0 : i32
    %c0_i32_0 = arith.constant 0 : i32
    return %c0_i32, %arg0 : i32, i32
  }
  func.func @transform_2(%arg0: i32, %arg1: i32) -> (i32, i32) {
    %c0_i32 = arith.constant 0 : i32
    %c0_i32_0 = arith.constant 0 : i32
    return %c0_i32, %arg0 : i32, i32
  }
  func.func @transform_3(%arg0: i32, %arg1: i32) -> (i32, i32) {
    %c0_i32 = arith.constant 0 : i32
    return %arg1, %arg0 : i32, i32
  }
}

</mosaic_0001>

<bundles_post_ra>
// kernel: tpu_custom_call.1
= control target key start
LH: loop header
LB: loop body
LE: loop exit
PB: predicated region body
PF: predicated region fallthrough
CT: control target
= control target key end

     0   :  { %8 = vsyncpa [#allocation3], 0  ;;  %s396_s0 = inlined_call_operand.hbm [shape: f32[8,128], index: 0, kind: input, shape index: {}]   ;;  %s397_s1 = inlined_call_operand.hbm [shape: bf16[128,128], index: 1, kind: input, shape index: {}]   ;;  %s398_s2 = inlined_call_operand.vmem [shape: f32[1,128], index: 2, kind: input, shape index: {}]   ;;  %s399_s3 = inlined_call_operand.hbm [shape: f32[8,128], index: 3, kind: output, shape index: {}]  }
   0x1   :  { %9 = vsyncpa [#allocation6], 0 }
   0x2   :  { %10 = vsyncpa [#allocation4], 0  ;;  %s323_s12 = smov [#allocation2]   ;;  %s324_s14 = smov [#allocation5]  }
   0x3   :  { %s17_s13 = sshll.u32 %s323_s12, 4  ;;  %s26_s15 = sshll.u32 %s324_s14, 4  ;;  %s18_s13 = int_to_ptr.vmem [resolvable:$true] %s17_s13  ;;  %s350_s15 = int_to_ptr.vmem [resolvable:$true] %s26_s15 }
   0x4   :  { %s251_s18 = scalar_lea.hbm %s396_s0, 128 }
   0x5   :  { %p252_p0 = scmp.ne.s32.totalorder %s396_s0, %s251_s18  ;;  %p255_p1 = scmp.lt.u32.totalorder %s251_s18, %s396_s0 }
   0x7   :  { %p257_p2 = pnand %p255_p1, %p252_p0 }
   0x9   :  { %260 = shalt.err (!%p257_p2)
}
   0xa   :  { %s261_s23 = scalar_lea.vmem %s18_s13, 128  ;;  %p266_p4 = scmp.lt.s32.totalorder %s18_s13, %s18_s13 }
   0xb   :  { %p262_p3 = scmp.ne.s32.totalorder %s18_s13, %s261_s23  ;;  %p267_p5 = scmp.lt.s32.totalorder %s261_s23, %s261_s23 }
   0xd   :  { %p268_p6 = por %p267_p5, %p266_p4 }
   0xf   :  { %p269_p7 = pnand %p268_p6, %p262_p3 }
  0x11   :  { %272 = shalt.err (!%p269_p7)
}
  0x12   :  { %20 = dma.hbm_to_vmem [thread:$0]  %s396_s0, 128, %s18_s13, [#allocation3]  }
  0x13   :  { %s273_s28 = scalar_lea.hbm %s397_s1, 1024 }
  0x14   :  { %p274_p8 = scmp.ne.s32.totalorder %s397_s1, %s273_s28  ;;  %p277_p9 = scmp.lt.u32.totalorder %s273_s28, %s397_s1 }
  0x16   :  { %p279_p10 = pnand %p277_p9, %p274_p8 }
  0x18   :  { %282 = shalt.err (!%p279_p10)
}
  0x19   :  { %s283_s6 = scalar_lea.vmem %s350_s15, 1024  ;;  %p288_p12 = scmp.lt.s32.totalorder %s350_s15, %s350_s15 }
  0x1a   :  { %p284_p11 = scmp.ne.s32.totalorder %s350_s15, %s283_s6  ;;  %p289_p13 = scmp.lt.s32.totalorder %s283_s6, %s283_s6 }
  0x1c   :  { %p290_p0 = por %p289_p13, %p288_p12 }
  0x1e   :  { %p291_p1 = pnand %p290_p0, %p284_p11 }
  0x20   :  { %294 = shalt.err (!%p291_p1)
}
  0x21   :  { %s325_s0 = smov 64   ;;  %s326_s7 = smov 4  }
  0x22   :  { %32 = dma.hbm_to_vmem [thread:$0]  %s397_s1, 1024, %s350_s15, [#allocation6], %s325_s0, %s325_s0, %s326_s7  }
  0x23   :  { %317 = dma.done.wait [#allocation3], 128  }
  0x24   :  { %318 = vsyncadd [#allocation3], 4294967168 }
  0x25   :  { %319 = dma.done.wait [#allocation6], 1024  }
  0x26   :  { %320 = vsyncadd [#allocation6], 4294966272  ;;  %v42_v0 = vld [vmem:[#allocation2] sm:$0xff]  ;;  %v239_v1 = vld [vmem:[#allocation5] sm:$0xff]   ;;  %v327_v2 = vmov 0.0   ;;  %v47_v5 = vlaneseq  ;;  %vm328_vm1 = vmmov 0  }
  0x27   :  { %43 = vadd.xlane.f32.xlu0 %v42_v0  ;;  %212 = vmatprep.subr.bf16.mxu0 %v327_v2  ;;  %v240_v3 = vld [vmem:[#allocation5 + $0x8] sm:$0xff]   ;;  %v241_v4 = vld [vmem:[#allocation5 + $0x10] sm:$0xff]   ;;  %v242_v12 = vld [vmem:[#allocation5 + $0x18] sm:$0xff]   ;;  %s329_s11 = smov [#allocation7]  }
  0x28   :  { %213 = vmatpush3.bf16.msra.mxu0 %v239_v1  ;;  %v48_v6 = vand.u32 127, %v47_v5  ;;  %v243_v13 = vld [vmem:[#allocation5 + $0x20] sm:$0xff]   ;;  %v244_v14 = vld [vmem:[#allocation5 + $0x28] sm:$0xff]   ;;  %228 = vmatprep.mubr.msk.bf16.mxu0 %vm328_vm1, %v327_v2  ;;  %v245_v15 = vld [vmem:[#allocation5 + $0x30] sm:$0xff]   ;;  %s184_s12 = sshll.u32 %s329_s11, 4  ;;  %s185_s12 = int_to_ptr.vmem [resolvable:$true] %s184_s12 }
  0x29   :  { %214 = vmatprep.subr.bf16.mxu0 %v327_v2  ;;  %v246_v16 = vld [vmem:[#allocation5 + $0x38] sm:$0xff]   ;;  %s295_s13 = scalar_lea.vmem %s185_s12, 128  ;;  %p300_p3 = scmp.lt.s32.totalorder %s185_s12, %s185_s12 }
  0x2a   :  { %vm49_vm0 = vcmp.lt.s32.totalorder %v48_v6, 32  ;;  %v194_v23 = vld [vmem:[%s398_s2] ss:$0 sm:$0xff]  ;;  %p296_p2 = scmp.ne.s32.totalorder %s185_s12, %s295_s13  ;;  %p301_p4 = scmp.lt.s32.totalorder %s295_s13, %s295_s13 }
  0x2c   :  { %215 = vmatpush3.bf16.msra.mxu0 %v240_v3  ;;  %p302_p5 = por %p301_p4, %p300_p3 }
  0x2d   :  { %216 = vmatprep.subr.bf16.mxu0 %v327_v2 }
  0x2e   :  { %p303_p6 = pnand %p302_p5, %p296_p2 }
  0x30   :  { %217 = vmatpush3.bf16.msra.mxu0 %v241_v4 }
  0x31   :  { %218 = vmatprep.subr.bf16.mxu0 %v327_v2 }
  0x34   :  { %219 = vmatpush3.bf16.msra.mxu0 %v242_v12 }
  0x35   :  { %220 = vmatprep.subr.bf16.mxu0 %v327_v2 }
  0x38   :  { %221 = vmatpush3.bf16.msra.mxu0 %v243_v13 }
  0x39   :  { %222 = vmatprep.subr.bf16.mxu0 %v327_v2 }
  0x3c   :  { %223 = vmatpush3.bf16.msra.mxu0 %v244_v14 }
  0x3d   :  { %224 = vmatprep.subr.bf16.mxu0 %v327_v2 }
  0x40   :  { %225 = vmatpush3.bf16.msra.mxu0 %v245_v15 }
  0x41   :  { %226 = vmatprep.subr.bf16.mxu0 %v327_v2 }
  0x44   :  { %227 = vmatpush3.bf16.msra.mxu0 %v246_v16 }
  0xb4   :  { %v44_v7 = vpop.xlane.xlu0 %43 }
  0xb5   :  { %v45_v8 = vmul.f32 0.03125, %v44_v7 }
  0xb7   :  { %v46_v9 = vsub.f32 %v42_v0, %v45_v8 }
  0xb9   :  { %v52_v10 = vsel %vm49_vm0, %v46_v9, 0.0 }
  0xba   :  { %v53_v11 = vmul.f32 %v52_v10, %v52_v10 }
  0xbc   :  { %54 = vadd.xlane.f32.xlu0 %v53_v11 }
 0x149   :  { %v55_v17 = vpop.xlane.xlu0 %54 }
 0x14a   :  { %v56_v18 = vmul.f32 0.03125, %v55_v17 }
 0x14c   :  { %v57_v19 = vadd.f32 1e-05, %v56_v18 }
 0x14e   :  { %247 = vrsqrt.f32 %v57_v19 }
 0x158   :  { %v248_v20 = vpop.eup %247 }
 0x159   :  { %v59_v21 = vmul.f32 %v248_v20, %v52_v10 }
 0x15b   :  { %v60_v22 = vpack.c.bf16 %v59_v21, %v59_v21 }
 0x15d   :  { %229 = vmatmul.mubr.bf16.vlgmr.msra.gmra.mrb[0].mxu0 %v60_v22 }
 0x230   :  { %v166_v24 = vpop.f32.mrb[0].mxu0 }
 0x231   :  { %v167_v25 = vadd.f32 %v194_v23, %v166_v24  ;;  %v230_v26 = vpop.f32.mrb[1].mxu0 }
 0x232   :  { %v169_v27 = vpop.f32.mrb[2].mxu0 }
 0x233   :  { %v173_v28 = vmul.f32 0.70710677, %v167_v25  ;;  %v231_v29 = vpop.f32.mrb[3].mxu0  ;;  %v172_v31 = vmul.f32 0.5, %v167_v25 }
 0x235   :  { %249 = verf.f32 %v173_v28 }
 0x23f   :  { %v250_v30 = vpop.eup %249 }
 0x240   :  { %v175_v32 = vadd.f32 1.0, %v250_v30 }
 0x242   :  { %v176_v33 = vmul.f32 %v175_v32, %v172_v31 }
 0x244   :  { %177 = vst [vmem:[#allocation7] sm:$0xff] %v176_v33 }
 0x245   :  { %306 = shalt.err (!%p303_p6)
}
 0x246   :  { %s307_s15 = scalar_lea.hbm %s399_s3, 128 }
 0x247   :  { %p308_p7 = scmp.ne.s32.totalorder %s399_s3, %s307_s15  ;;  %p311_p8 = scmp.lt.u32.totalorder %s307_s15, %s399_s3 }
 0x249   :  { %p313_p9 = pnand %p311_p8, %p308_p7 }
 0x24b   :  { %316 = shalt.err (!%p313_p9)
}
 0x24c   :  { %187 = dma.vmem_to_hbm [thread:$0]  %s185_s12, 128, %s399_s3, [#allocation4]  }
 0x24d   :  { %321 = dma.done.wait [#allocation4], 128  }
 0x24e   :  { %322 = vsyncadd [#allocation4], 4294967168 }
 0x24f   :  { %191 = vsyncpa [#allocation3], 1 }
 0x250   :  { %192 = vsyncpa [#allocation6], 1 }
 0x251   :  { %193 = vsyncpa [#allocation4], 1 }

</bundles_post_ra>
